<compile_context>
chip_gen: v6e
topology: v6e:2x2x1
jax: 0.10.0
libtpu: 0.0.40
codegen_flags: <defaults>
</compile_context>

<pallas_src>
import functools

import jax
import jax.numpy as jnp
from jax.experimental import pallas as pl
from jax.experimental.pallas import tpu as pltpu


def _round_up(x, m):
    return ((x + m - 1) // m) * m


def _vmem_limit_bytes():
    """Per-generation VMEM budget with headroom for compiler-internal scratch."""
    cap = 128 << 20
    try:
        info = pltpu.get_tpu_info()
        cap = int(getattr(info, "vmem_capacity_bytes", 0) or (128 << 20))
    except Exception:
        pass
    # v7x (64 MiB physical) -> ~56 MiB; v5e/v6e (128 MiB) -> 112 MiB.
    return min(cap - cap // 8, 112 << 20)


def _pick_tile(n, unit, t_default):
    """Largest tile <= t_default (multiple of `unit`) with modest padding waste."""
    n_u = _round_up(n, unit)
    if n_u <= t_default:
        return n_u
    t = t_default
    # Shrink while the last padded tile would waste > ~12.5% of the real rows.
    while t > unit and (_round_up(n, t) - n) > 0.125 * n:
        t //= 2
    return max(_round_up(t, unit), unit)


def _vmem_estimate(tm, tk, n_src_p, feat_w, c_hid_p, c_out_p, feats_resident):
    adjt = 2 * tm * tk * 1                     # int8 adjT tile, double-buffered
    cast_tmp = tm * tk * 2                     # in-kernel bf16 cast temporary
    feats = 2 * (n_src_p if feats_resident else tk) * feat_w * 2
    acc = tm * feat_w * 4
    out = 2 * tm * c_out_p * 4
    wts = 2 * (feat_w * c_hid_p + c_hid_p + c_hid_p * c_out_p + c_out_p) * 4
    return adjt + cast_tmp + feats + acc + out + wts


def firstconv_kernel(adjT_ref, featsx_ref, w1_ref, b1_ref, w2_ref, b2_ref,
                     out_ref, acc_ref, *, tk, c_in, feats_resident):
    """Grid: (N_dst tiles [parallel], N_src tiles [arbitrary, reduction])."""
    k = pl.program_id(1)

    @pl.when(k == 0)
    def _init():
        acc_ref[...] = jnp.zeros_like(acc_ref)

    if feats_resident:
        # featsx is fully resident in VMEM; take this reduction step's K-slice.
        start = pl.multiple_of(k * tk, tk)
        fx = featsx_ref[pl.ds(start, tk), :]
    else:
        fx = featsx_ref[...]

    # adjT streamed as int8 (exact for 0/1); cast to bf16 on the VPU (hidden
    # under the adjT DMA), accumulate in f32 on the MXU.  The appended ones
    # column in featsx makes the in-degree accumulate for free.
    acc_ref[...] += jnp.dot(adjT_ref[...].astype(jnp.bfloat16), fx,
                            preferred_element_type=jnp.float32)

    @pl.when(k == pl.num_programs(1) - 1)
    def _epilogue():
        acc = acc_ref[...]                       # (TM, feat_w) f32, lane-dense
        deg = acc[:, c_in:c_in + 1]              # in-degree (ones-column trick)
        # Exact divide (one-time epilogue cost; avoids approx-reciprocal error).
        agr = acc / (deg + 1e-8)                 # padded cols hit zero rows of w1

        # MLP: lin1 -> tanh -> lin2 (weights zero-padded to lane-dense widths;
        # the degree/zero columns of `agr` multiply zero rows of w1 -> no effect).
        h = jnp.dot(agr, w1_ref[...], preferred_element_type=jnp.float32) + b1_ref[...]
        h = jnp.tanh(h)
        o = jnp.dot(h, w2_ref[...], preferred_element_type=jnp.float32) + b2_ref[...]
        out_ref[...] = o.astype(out_ref.dtype)


def first_conv(adjT, feats, w1, b1, w2, b2, *, tm=512, tk=4096):
    """adjT: [N_dst, N_src] dense 0/1 adjacency (any dtype; pass padded int8 to
    skip the wrapper-side cast), feats: [N_src, C_in]; weights input-major.
    """
    n_dst, n_src = adjT.shape
    c_in = feats.shape[1]
    c_hid = w1.shape[1]
    c_out = w2.shape[1]

    # Lane-dense widths: aggregation accumulator, hidden and output channels.
    feat_w = _round_up(c_in + 1, 128)
    c_hid_p = _round_up(c_hid, 128)
    c_out_p = _round_up(c_out, 128)

    vmem_limit = _vmem_limit_bytes()

    # Tile selection: as large as possible (amortize ~0.35us/step overhead),
    # but shrink when padding waste or VMEM pressure gets significant.
    tm = _pick_tile(n_dst, 8, tm)
    tk = _pick_tile(n_src, 128, tk)

    # v7x megacore: keep >= 2 destination tiles so the "parallel" axis shards
    # across both TensorCores (costs one extra tiny step on 1-TC v5e/v6e).
    n_dst_8 = _round_up(n_dst, 8)
    if 16 <= n_dst_8 <= tm:
        tm = _round_up((n_dst_8 + 1) // 2, 8)

    n_dst_p = _round_up(n_dst, tm)
    n_src_p = _round_up(n_src, tk)

    # Keep featsx resident in VMEM when it is small; otherwise stream per k-tile.
    feats_resident = (2 * n_src_p * feat_w * 2) <= vmem_limit // 4

    # Leave headroom: double-buffered working set <= ~2/3 of the VMEM budget.
    while tk > 512 and _vmem_estimate(tm, tk, n_src_p, feat_w, c_hid_p, c_out_p,
                                      feats_resident) > (2 * vmem_limit) // 3:
        tk //= 2
        n_src_p = _round_up(n_src, tk)

    # adjT streamed as int8 (exact for 0/1; multi-edge counts must stay <= 127).
    # No extra HBM pass if the caller already provides a padded int8 adjT.
    if adjT.dtype == jnp.int8 and adjT.shape == (n_dst_p, n_src_p):
        adjT_p = adjT
    elif adjT.shape == (n_dst_p, n_src_p):
        adjT_p = adjT.astype(jnp.int8)
    else:
        adjT_p = jnp.zeros((n_dst_p, n_src_p), jnp.int8)
        adjT_p = adjT_p.at[:n_dst, :n_src].set(adjT.astype(jnp.int8))

    # [feats | 1 | 0...]: ones column at index c_in makes the degree accumulate
    # in the same MXU pass; zero padding changes neither sums nor degrees.
    featsx_p = jnp.zeros((n_src_p, feat_w), jnp.bfloat16)
    featsx_p = featsx_p.at[:n_src, :c_in].set(feats.astype(jnp.bfloat16))
    featsx_p = featsx_p.at[:n_src, c_in].set(jnp.ones((n_src,), jnp.bfloat16))

    # Zero-padded MLP params (padded rows/cols contribute exactly zero).
    w1_p = jnp.zeros((feat_w, c_hid_p), jnp.float32).at[:c_in, :c_hid].set(w1)
    b1_p = jnp.zeros((1, c_hid_p), jnp.float32).at[:, :c_hid].set(b1)
    w2_p = jnp.zeros((c_hid_p, c_out_p), jnp.float32).at[:c_hid, :c_out].set(w2)
    b2_p = jnp.zeros((1, c_out_p), jnp.float32).at[:, :c_out].set(b2)

    grid = (n_dst_p // tm, n_src_p // tk)

    if feats_resident:
        featsx_spec = pl.BlockSpec((n_src_p, feat_w), lambda i, k: (0, 0))
    else:
        featsx_spec = pl.BlockSpec((tk, feat_w), lambda i, k: (k, 0))

    kernel = functools.partial(firstconv_kernel, tk=tk, c_in=c_in,
                               feats_resident=feats_resident)

    out_p = pl.pallas_call(
        kernel,
        out_shape=jax.ShapeDtypeStruct((n_dst_p, c_out_p), jnp.float32),
        grid_spec=pltpu.PrefetchScalarGridSpec(
            num_scalar_prefetch=0,
            grid=grid,
            in_specs=[
                pl.BlockSpec((tm, tk), lambda i, k: (i, k)),            # adjT (int8)
                featsx_spec,                                            # [feats|1|0..]
                pl.BlockSpec((feat_w, c_hid_p), lambda i, k: (0, 0)),   # w1 (resident)
                pl.BlockSpec((1, c_hid_p), lambda i, k: (0, 0)),        # b1
                pl.BlockSpec((c_hid_p, c_out_p), lambda i, k: (0, 0)),  # w2
                pl.BlockSpec((1, c_out_p), lambda i, k: (0, 0)),        # b2
            ],
            out_specs=pl.BlockSpec((tm, c_out_p), lambda i, k: (i, 0)),
            scratch_shapes=[pltpu.VMEM((tm, feat_w), jnp.float32)],
        ),
        compiler_params=pltpu.CompilerParams(
            dimension_semantics=("parallel", "arbitrary"),
            vmem_limit_bytes=vmem_limit,
        ),
    )(adjT_p, featsx_p, w1_p, b1_p, w2_p, b2_p)

    # NOTE: padded destination rows (>= n_dst) carry nonzero bias-derived values
    # in out_p; always slice before consuming.
    return out_p[:n_dst, :c_out]


def _linear_init(key, fan_in, fan_out):
    """Deterministic nn.Linear.reset_parameters-style init (kaiming-uniform-ish)."""
    kw, kb = jax.random.split(key)
    bound_w = (1.0 / fan_in) ** 0.5 * (3.0 ** 0.5)
    bound_b = (1.0 / fan_in) ** 0.5
    # stored as [fan_in, fan_out] so the kernel does x @ W (== x @ W_torch.T)
    w = jax.random.uniform(kw, (fan_in, fan_out), jnp.float32, -bound_w, bound_w)
    b = jax.random.uniform(kb, (1, fan_out), jnp.float32, -bound_b, bound_b)
    return w, b


if __name__ == "__main__":
    key = jax.random.PRNGKey(0)
    k_feat, k_edge, k_l1, k_l2 = jax.random.split(key, 4)

    # Small synthetic graph: 16 source nodes, 16 destination nodes, 8 input channels.
    N_SRC, N_DST = 16, 16
    C_IN, C_HID, C_OUT = 8, 32, 16
    N_EDGES = 48

    # subgraph_feats['news']
    feats = jax.random.normal(k_feat, (N_SRC, C_IN), jnp.float32)

    # synthetic edge_index[atr] as a dense adjacency (row=src, col=dst), then transpose.
    src = jax.random.randint(k_edge, (N_EDGES,), 0, N_SRC)
    dst = jax.random.randint(jax.random.fold_in(k_edge, 1), (N_EDGES,), 0, N_DST)
    adj = jnp.zeros((N_SRC, N_DST), jnp.float32).at[src, dst].set(1.0)
    adjT = adj.T  # [N_dst, N_src]

    # MLP parameters (deterministic, PyTorch-Linear-style ranges)
    w1, b1 = _linear_init(k_l1, C_IN, C_HID)
    w2, b2 = _linear_init(k_l2, C_HID, C_OUT)

    out = first_conv(adjT, feats, w1, b1, w2, b2)
    out = jax.block_until_ready(out)

    # Pure-JAX reference (feats rounded to bf16 to mirror the kernel's input cast).
    feats_bf = feats.astype(jnp.bfloat16).astype(jnp.float32)
    deg = adjT.sum(axis=1, keepdims=True)
    agr = (adjT @ feats_bf) / (deg + 1e-8)
    ref = jnp.tanh(agr @ w1 + b1) @ w2 + b2

    assert out.shape == (N_DST, C_OUT)
    assert jnp.allclose(out, ref, atol=2e-3, rtol=2e-3), (
        float(jnp.max(jnp.abs(out - ref))))

    print("KERNEL_OK")
</pallas_src>

<mosaic_0001>
module attributes {stable_mosaic.version = 11 : i64} {
  func.func @firstconv_kernel(%arg0: i32, %arg1: i32, %arg2: memref<8x128xi8, #tpu.memory_space<vmem>>, %arg3: memref<128x128xbf16, #tpu.memory_space<vmem>>, %arg4: memref<128x128xf32, #tpu.memory_space<vmem>>, %arg5: memref<1x128xf32, #tpu.memory_space<vmem>>, %arg6: memref<128x128xf32, #tpu.memory_space<vmem>>, %arg7: memref<1x128xf32, #tpu.memory_space<vmem>>, %arg8: memref<8x128xf32, #tpu.memory_space<vmem>>, %arg9: memref<8x128xf32, #tpu.memory_space<vmem>>) attributes {dimension_semantics = [#tpu.dimension_semantics<parallel>, #tpu.dimension_semantics<arbitrary>], iteration_bounds = array<i64: 2, 1>, scalar_prefetch = 0 : i64, scratch_operands = 1 : i64, tpu.core_type = #tpu.core_type<tc>, window_params = [{transform_indices = @transform_0, window_bounds = array<i64: 8, 128>}, {pipeline_mode = #tpu.pipeline_mode<synchronous>, transform_indices = @transform_1, window_bounds = array<i64: 128, 128>}, {pipeline_mode = #tpu.pipeline_mode<synchronous>, transform_indices = @transform_2, window_bounds = array<i64: 128, 128>}, {pipeline_mode = #tpu.pipeline_mode<synchronous>, transform_indices = @transform_3, window_bounds = array<i64: 1, 128>}, {pipeline_mode = #tpu.pipeline_mode<synchronous>, transform_indices = @transform_4, window_bounds = array<i64: 128, 128>}, {pipeline_mode = #tpu.pipeline_mode<synchronous>, transform_indices = @transform_5, window_bounds = array<i64: 1, 128>}, {transform_indices = @transform_6, window_bounds = array<i64: 8, 128>}]} {
    %c0_i32 = arith.constant 0 : i32
    %0 = arith.cmpi eq, %arg1, %c0_i32 : i32
    %1 = arith.extui %0 : i1 to i32
    %c0_i32_0 = arith.constant 0 : i32
    %2 = arith.cmpi ne, %1, %c0_i32_0 : i32
    scf.if %2 {
      %cst_9 = arith.constant 0.000000e+00 : f32
      %16 = vector.broadcast %cst_9 : f32 to vector<8x128xf32>
      %c0_10 = arith.constant 0 : index
      %c0_11 = arith.constant 0 : index
      %17 = vector.load %arg9[%c0_10, %c0_11] : memref<8x128xf32, #tpu.memory_space<vmem>>, vector<8x128xf32>
      tpu.vector_store %arg9[%c0_10, %c0_11], %16 {strides = array<i32>} : memref<8x128xf32, #tpu.memory_space<vmem>>, vector<8x128xf32>,
    } else {
    }
    %c128_i32 = arith.constant 128 : i32
    %3 = arith.muli %arg1, %c128_i32 : i32
    %4 = tpu.assume_multiple %3, 128 : i32
    %5 = arith.index_cast %4 : i32 to index
    %c0 = arith.constant 0 : index
    %6 = vector.load %arg3[%5, %c0] : memref<128x128xbf16, #tpu.memory_space<vmem>>, vector<128x128xbf16>
    %c0_1 = arith.constant 0 : index
    %c0_2 = arith.constant 0 : index
    %7 = vector.load %arg9[%c0_1, %c0_2] : memref<8x128xf32, #tpu.memory_space<vmem>>, vector<8x128xf32>
    %c0_3 = arith.constant 0 : index
    %c0_4 = arith.constant 0 : index
    %8 = vector.load %arg2[%c0_3, %c0_4] : memref<8x128xi8, #tpu.memory_space<vmem>>, vector<8x128xi8>
    %9 = arith.sitofp %8 : vector<8x128xi8> to vector<8x128xbf16>
    %cst = arith.constant dense<0.000000e+00> : vector<8x128xf32>
    %10 = tpu.matmul %9, %6, %cst {dimension_numbers = #tpu.dot_dimension_numbers<[1], [0], [0], [1], [0, 0, 1, 1], [], []>} : vector<8x128xbf16>, vector<128x128xbf16>, vector<8x128xf32> -> vector<8x128xf32>
    %11 = arith.addf %7, %10 : vector<8x128xf32>
    %c0_5 = arith.constant 0 : index
    %c0_6 = arith.constant 0 : index
    %12 = vector.load %arg9[%c0_5, %c0_6] : memref<8x128xf32, #tpu.memory_space<vmem>>, vector<8x128xf32>
    tpu.vector_store %arg9[%c0_5, %c0_6], %11 {strides = array<i32>} : memref<8x128xf32, #tpu.memory_space<vmem>>, vector<8x128xf32>,
    %c0_i32_7 = arith.constant 0 : i32
    %13 = arith.cmpi eq, %arg1, %c0_i32_7 : i32
    %14 = arith.extui %13 : i1 to i32
    %c0_i32_8 = arith.constant 0 : i32
    %15 = arith.cmpi ne, %14, %c0_i32_8 : i32
    scf.if %15 {
      %c0_9 = arith.constant 0 : index
      %c0_10 = arith.constant 0 : index
      %16 = vector.load %arg9[%c0_9, %c0_10] : memref<8x128xf32, #tpu.memory_space<vmem>>, vector<8x128xf32>
      %17 = vector.extract_strided_slice %16 {offsets = [0, 8], sizes = [8, 1], strides = [1, 1]} : vector<8x128xf32> to vector<8x1xf32>
      %cst_11 = arith.constant 9.99999993E-9 : f32
      %18 = vector.broadcast %cst_11 : f32 to vector<8x1xf32>
      %19 = arith.addf %17, %18 : vector<8x1xf32>
      %20 = vector.broadcast %19 : vector<8x1xf32> to vector<8x128xf32>
      %21 = arith.divf %16, %20 : vector<8x128xf32>
      %c0_12 = arith.constant 0 : index
      %c0_13 = arith.constant 0 : index
      %22 = vector.load %arg4[%c0_12, %c0_13] : memref<128x128xf32, #tpu.memory_space<vmem>>, vector<128x128xf32>
      %cst_14 = arith.constant dense<0.000000e+00> : vector<8x128xf32>
      %23 = tpu.matmul %21, %22, %cst_14 {dimension_numbers = #tpu.dot_dimension_numbers<[1], [0], [0], [1], [0, 0, 1, 1], [], []>} : vector<8x128xf32>, vector<128x128xf32>, vector<8x128xf32> -> vector<8x128xf32>
      %c0_15 = arith.constant 0 : index
      %c0_16 = arith.constant 0 : index
      %24 = vector.load %arg5[%c0_15, %c0_16] : memref<1x128xf32, #tpu.memory_space<vmem>>, vector<1x128xf32>
      %25 = vector.broadcast %24 : vector<1x128xf32> to vector<8x128xf32>
      %26 = arith.addf %23, %25 : vector<8x128xf32>
      %27 = math.tanh %26 : vector<8x128xf32>
      %c0_17 = arith.constant 0 : index
      %c0_18 = arith.constant 0 : index
      %28 = vector.load %arg6[%c0_17, %c0_18] : memref<128x128xf32, #tpu.memory_space<vmem>>, vector<128x128xf32>
      %cst_19 = arith.constant dense<0.000000e+00> : vector<8x128xf32>
      %29 = tpu.matmul %27, %28, %cst_19 {dimension_numbers = #tpu.dot_dimension_numbers<[1], [0], [0], [1], [0, 0, 1, 1], [], []>} : vector<8x128xf32>, vector<128x128xf32>, vector<8x128xf32> -> vector<8x128xf32>
      %c0_20 = arith.constant 0 : index
      %c0_21 = arith.constant 0 : index
      %30 = vector.load %arg7[%c0_20, %c0_21] : memref<1x128xf32, #tpu.memory_space<vmem>>, vector<1x128xf32>
      %31 = vector.broadcast %30 : vector<1x128xf32> to vector<8x128xf32>
      %32 = arith.addf %29, %31 : vector<8x128xf32>
      %c0_22 = arith.constant 0 : index
      %c0_23 = arith.constant 0 : index
      %33 = vector.load %arg8[%c0_22, %c0_23] : memref<8x128xf32, #tpu.memory_space<vmem>>, vector<8x128xf32>
      tpu.vector_store %arg8[%c0_22, %c0_23], %32 {strides = array<i32>} : memref<8x128xf32, #tpu.memory_space<vmem>>, vector<8x128xf32>,
    } else {
    }
    return
  }
  func.func @transform_0(%arg0: i32, %arg1: i32) -> (i32, i32) {
    %c0_i32 = arith.constant 0 : i32
    return %arg0, %arg1 : i32, i32
  }
  func.func @transform_1(%arg0: i32, %arg1: i32) -> (i32, i32) {
    %c0_i32 = arith.constant 0 : i32
    %c0_i32_0 = arith.constant 0 : i32
    %c0_i32_1 = arith.constant 0 : i32
    return %c0_i32, %c0_i32_0 : i32, i32
  }
  func.func @transform_2(%arg0: i32, %arg1: i32) -> (i32, i32) {
    %c0_i32 = arith.constant 0 : i32
    %c0_i32_0 = arith.constant 0 : i32
    %c0_i32_1 = arith.constant 0 : i32
    return %c0_i32, %c0_i32_0 : i32, i32
  }
  func.func @transform_3(%arg0: i32, %arg1: i32) -> (i32, i32) {
    %c0_i32 = arith.constant 0 : i32
    %c0_i32_0 = arith.constant 0 : i32
    %c0_i32_1 = arith.constant 0 : i32
    return %c0_i32, %c0_i32_0 : i32, i32
  }
  func.func @transform_4(%arg0: i32, %arg1: i32) -> (i32, i32) {
    %c0_i32 = arith.constant 0 : i32
    %c0_i32_0 = arith.constant 0 : i32
    %c0_i32_1 = arith.constant 0 : i32
    return %c0_i32, %c0_i32_0 : i32, i32
  }
  func.func @transform_5(%arg0: i32, %arg1: i32) -> (i32, i32) {
    %c0_i32 = arith.constant 0 : i32
    %c0_i32_0 = arith.constant 0 : i32
    %c0_i32_1 = arith.constant 0 : i32
    return %c0_i32, %c0_i32_0 : i32, i32
  }
  func.func @transform_6(%arg0: i32, %arg1: i32) -> (i32, i32) {
    %c0_i32 = arith.constant 0 : i32
    %c0_i32_0 = arith.constant 0 : i32
    return %arg0, %c0_i32 : i32, i32
  }
}

</mosaic_0001>

<bundles_post_ra>
// kernel: tpu_custom_call.1
= control target key start
LH: loop header
LB: loop body
LE: loop exit
PB: predicated region body
PF: predicated region fallthrough
CT: control target
= control target key end

     0   :  { %s1540_s0 = inlined_call_operand.hbm [shape: s8[16,128], index: 0, kind: input, shape index: {}]   ;;  %s1541_s1 = inlined_call_operand.hbm [shape: bf16[128,128], index: 1, kind: input, shape index: {}]   ;;  %s1542_s2 = inlined_call_operand.hbm [shape: f32[128,128], index: 2, kind: input, shape index: {}]   ;;  %s1543_s3 = inlined_call_operand.vmem [shape: f32[1,128], index: 3, kind: input, shape index: {}]   ;;  %s1544_s4 = inlined_call_operand.hbm [shape: f32[128,128], index: 4, kind: input, shape index: {}]   ;;  %s1545_s5 = inlined_call_operand.vmem [shape: f32[1,128], index: 5, kind: input, shape index: {}]   ;;  %s1546_s6 = inlined_call_operand.hbm [shape: f32[16,128], index: 6, kind: output, shape index: {}]  }
   0x1   :  { %1550 = sst [smem:[#allocation16_spill]] %s1541_s1 }
   0x2   :  { %1551 = sst [smem:[#allocation17_spill]] %s1542_s2 }
   0x3   :  { %1552 = sst [smem:[#allocation18_spill]] %s1544_s4 }
   0x4   :  { %11 = vsyncpa [#allocation4], 0 }
   0x5   :  { %13 = vsyncpa [#allocation4 + $0x1], 0 }
   0x6   :  { %14 = vsyncpa [#allocation7], 0 }
   0x7   :  { %15 = vsyncpa [#allocation10], 0 }
   0x8   :  { %16 = vsyncpa [#allocation5], 0 }
   0x9   :  { %18 = vsyncpa [#allocation5 + $0x1], 0  ;;  %s1288_s21 = smov 0   ;;  %s1290_s22 = smov 0  }
   0xa   :  { %s1292_s23 = smov 0   ;;  %s1294_s24 = smov 0  }
   0xb   :  { %s1296_s25 = smov 0   ;;  %s1298_s26 = smov 0  }
   0xc LB: > { %s770_s27 = sadd.s32 4294967295, %s1239_s26   ;;  %s771_s28 = sadd.s32 4294967294, %s1239_s26   ;;  %s1239_s26 = sphi %s1298_s26, %s24_s26   ;;  %s1235_s25 = sphi %s1296_s25, %s1573_s25   ;;  %s1231_s24 = sphi %s1294_s24, %s1572_s24   ;;  %s1227_s23 = sphi %s1292_s23, %s1571_s23   ;;  %s1223_s22 = sphi %s1290_s22, %s1570_s22   ;;  %s1219_s21 = sphi %s1288_s21, %s1569_s21  }
   0xd   : > { %p58_p0 = scmp.ne.s32.totalorder %s1223_s22, %s1219_s21  ;;  %p1322_p1 = scmp.eq.s32.totalorder %s770_s27, 0 }
   0xe   : > { %p1326_p2 = scmp.eq.s32.totalorder %s770_s27, 1  ;;  %p193_p3 = scmp.eq.s32.totalorder %s771_s28, 1 }
   0xf   : > { %s1553_s29 = scalar_select %p1322_p1, 1, 0 }
  0x10   : > { %p1332_p4 = por %p1322_p1, %p58_p0  ;;  %p772_p5 = scmp.ge.s32.totalorder %s1239_s26, 1 }
  0x11   : > { %p1337_p6 = por %p193_p3, %p58_p0  ;;  %p200_p7 = scmp.lt.s32.totalorder %s1239_s26, 3 }
  0x12   : > { %s1555_s7 = scalar_select %p1332_p4, 1, 0 }
  0x13   : > { %s1556_s8 = scalar_select %p1337_p6, 1, 0 }
  0x14   : > { %p1342_p8 = pnand %p772_p5, %p200_p7  ;;  %s1241_s10 = smov [#allocation6]  }
  0x15   : > { %s212_s11 = sshll.u32 %s1241_s10, 4  ;;  %s1242_s13 = smov [#allocation8]   ;;  %s213_s11 = int_to_ptr.vmem [resolvable:$true] %s212_s11 }
  0x16   : > { %p948_p9 = pneg %p1342_p8  ;;  %s225_s14 = sshll.u32 %s1242_s13, 4  ;;  %s226_s14 = int_to_ptr.vmem [resolvable:$true] %s225_s14 }
  0x17   : > { %s1056_s15 = scalar_lea.vmem %s213_s11, 1024  ;;  %p1064_p5 = scmp.lt.s32.totalorder %s213_s11, %s213_s11 }
  0x18   : > { %p1351_p11 = pnand %p948_p9, %p1322_p1  ;;  %p1057_p13 = scmp.ne.s32.totalorder %s213_s11, %s1056_s15 }
  0x19   : > { %p1065_p7 = scmp.lt.s32.totalorder %s1056_s15, %s1056_s15 }
  0x1a   : > { %p1047_p12 = pneg %p1351_p11 }
  0x1b   : > { %p1066_p10 = por %p1065_p7, %p1064_p5 }
  0x1c   : > { %p1059_p0 = pnand %p1057_p13, %p1047_p12 }
  0x1e   : > { %p1060_p3 = pneg %p1059_p0 }
  0x20   : > { %p1067_p9 = pnand %p1066_p10, %p1060_p3 }
  0x22   : > { %1070 = shalt.err (!%p1067_p9)
}
  0x23   : > { %s1243_s16 = smov 64   ;;  %s1244_s17 = smov 4  }
  0x24   : > { %s1559_s1 = sld [smem:[#allocation16_spill]]  ;;  %s1082_s20 = scalar_lea.vmem %s226_s14, 2048 }
  0x25   : > { %p1083_p6 = scmp.ne.s32.totalorder %s226_s14, %s1082_s20  ;;  %p1090_p1 = scmp.lt.s32.totalorder %s226_s14, %s226_s14 }
  0x26   : > { %p1091_p4 = scmp.lt.s32.totalorder %s1082_s20, %s1082_s20 }
  0x27   : > { %p1085_p13 = pnand %p1083_p6, %p1047_p12 }
  0x28   : > { %p1092_p5 = por %p1091_p4, %p1090_p1 }
  0x29   : > { %p1086_p0 = pneg %p1085_p13 }
  0x2a   : > { %951 = dma.hbm_to_vmem [thread:$0]  (!%p1351_p11), %s1559_s1, 1024, %s213_s11, [#allocation7], %s1243_s16, %s1243_s16, %s1244_s17  }
  0x2b   : > { %p1093_p10 = pnand %p1092_p5, %p1086_p0 }
  0x2d   : > { %1096 = shalt.err (!%p1093_p10)
}
  0x2e   : > { %s1245_s27 = smov 128   ;;  %s1246_s28 = smov 8  }
  0x2f   : > { %s1560_s2 = sld [smem:[#allocation17_spill]]  ;;  %s1247_s11 = smov [#allocation9]  }
  0x30   : > { %s241_s15 = sshll.u32 %s1247_s11, 4  ;;  %s242_s15 = int_to_ptr.vmem [resolvable:$true] %s241_s15 }
  0x31   : > { %s1108_s16 = scalar_lea.vmem %s242_s15, 2048  ;;  %p1116_p4 = scmp.lt.s32.totalorder %s242_s15, %s242_s15 }
  0x32   : > { %p1109_p6 = scmp.ne.s32.totalorder %s242_s15, %s1108_s16  ;;  %p1117_p7 = scmp.lt.s32.totalorder %s1108_s16, %s1108_s16 }
  0x34   : > { %p1111_p3 = pnand %p1109_p6, %p1047_p12  ;;  %p1118_p9 = por %p1117_p7, %p1116_p4 }
  0x35   : > { %954 = dma.hbm_to_vmem [thread:$0]  (!%p1351_p11), %s1560_s2, 2048, %s226_s14, [#allocation7], %s1245_s27, %s1245_s27, %s1246_s28  }
  0x36   : > { %p1112_p1 = pneg %p1111_p3 }
  0x38   : > { %p1119_p13 = pnand %p1118_p9, %p1112_p1 }
  0x3a   : > { %1122 = shalt.err (!%p1119_p13)
}
  0x3b   : > { %s1561_s4 = sld [smem:[#allocation18_spill]]  ;;  %s36_s14 = sadd.s32 1, %s1235_s25 }
  0x3c   : > { %p38_p12 = scmp.ge.s32.totalorder %s36_s14, 2  ;;  %s45_s19 = sadd.s32 1, %s1227_s23 }
  0x3d   : > { %p52_p0 = scmp.ne.s32.totalorder %s1227_s23, %s1223_s22  ;;  %p53_p5 = scmp.eq.s32.totalorder %s1239_s26, 0 }
  0x3e   : > { %s1575_s14 = smov (%p38_p12, %s36_s14), 0  ;;  %s778_s11 = sshll.u32 %s1235_s25, 5 }
  0x3f   : > { %p1388_p10 = por %p53_p5, %p52_p0  ;;  %p1394_p6 = por %p1326_p2, %p52_p0 }
  0x40   : > { %s40_s10 = ssub.s32 %s1235_s25, %s1575_s14  ;;  %s268_s17 = scalar_lea.hbm %s1540_s0, %s778_s11 }
  0x41   : > { %957 = dma.hbm_to_vmem [thread:$0]  (!%p1351_p11), %s1561_s4, 2048, %s242_s15, [#allocation10], %s1245_s27, %s1245_s27, %s1246_s28  }
  0x42   : > { %p969_p11 = scmp.lt.s32.totalorder %s1239_s26, 2  ;;  %p43_p3 = scmp.eq.s32.totalorder %s40_s10, 0 }
  0x43   : > { %s258_s27 = sand.u32 1, %s1227_s23  }
  0x44   : > { %s777_s28 = sshll.u32 %s258_s27, 1  ;;  %p1411_p2 = pnand %p969_p11, %p1388_p10 }
  0x45   : > { %s1403_s13 = scalar_select %p43_p3, %s1227_s23, %s45_s19  }
  0x46   : > { %s262_s18 = scalar_lea.vmem [#allocation3], %s777_s28  ;;  %s259_s2 = scalar_lea.sflag [#allocation4], %s258_s27 }
  0x47   : > { %s270_s1 = sshll.u32 %s262_s18, 4  ;;  %p1125_p1 = pneg %p1411_p2  ;;  %s271_s1 = int_to_ptr.vmem [resolvable:$true] %s270_s1 }
  0x48   : > { %s1136_s10 = scalar_lea.vmem %s271_s1, 32  ;;  %s1248_s19 = smov [#allocation3]  }
  0x49   : > { %p1137_p4 = scmp.ne.s32.totalorder %s271_s1, %s1136_s10  ;;  %s1141_s4 = sshll.u32 %s1248_s19, 4  ;;  %s1142_s4 = int_to_ptr.vmem [resolvable:$false] %s1141_s4 }
  0x4a   : > { %s1143_s11 = scalar_lea.vmem %s1142_s4, 64  ;;  %p1144_p13 = scmp.lt.s32.totalorder %s271_s1, %s1142_s4 }
  0x4b   : > { %p1139_p7 = pnand %p1137_p4, %p1125_p1  ;;  %p1145_p12 = scmp.lt.s32.totalorder %s1143_s11, %s1136_s10 }
  0x4d   : > { %p1140_p9 = pneg %p1139_p7  ;;  %p1146_p0 = por %p1145_p12, %p1144_p13 }
  0x4f   : > { %p1147_p5 = pnand %p1146_p0, %p1140_p9 }
  0x51   : > { %1150 = shalt.err (!%p1147_p5)
}
  0x52   : > { %961 = dma.hbm_to_vmem [thread:$0]  (!%p1411_p2), %s268_s17, 32, %s271_s1, %s259_s2  }
  0x53   : > { %279 = sbr.rel (%p1342_p8) target bundleno = 880 (0x370), region = 44  ;;  %s1422_s12 = sand.u32 (!%p1342_p8), 1, %s1223_s22  }
  0x54   : > { %s780_s27 = sshll.u32 (!%p1342_p8), %s1422_s12, 1  ;;  %s282_s28 = scalar_lea.sflag (!%p1342_p8), [#allocation4], %s1422_s12 }
  0x55   : > { %s1426_s15 = scalar_lea.vmem (!%p1342_p8), [#allocation3], %s780_s27  ;;  %p1565_p10 = scmp.ne.s32.totalorder (!%p1342_p8), %s1555_s7, 0 }
  0x58   : > { %1202 = dma.done.wait (%p1565_p10), %s282_s28, 32  }
  0x59   : > { %1204 = vsyncadd (%p1565_p10), %s282_s28, 4294967264  ;;  %p1566_p11 = scmp.ne.s32.totalorder %s1553_s29, 0 }
  0x5b   : > { %1206 = dma.done.wait (%p1566_p11), [#allocation7], 3072  }
  0x5c   : > { %1208 = vsyncadd (%p1566_p11), [#allocation7], 4294964224 }
  0x5d   : > { %1210 = dma.done.wait (%p1566_p11), [#allocation10], 2048  }
  0x5e   : > { %1212 = vsyncadd (%p1566_p11), [#allocation10], 4294965248  ;;  %v1249_v0 = vmov 0.0   ;;  %vm1250_vm0 = vmmov 0   ;;  %v1033_v1 = vld [vmem:[#allocation6 + $0x38] sm:$0xff]   ;;  %v1034_v2 = vld [vmem:[#allocation6 + $0x30] sm:$0xff]  }
  0x5f   : > { %842 = vmatprep.subr.bf16.mxu0 %v1249_v0  ;;  %858 = vmatprep.mubr.msk.bf16.mxu0 %vm1250_vm0, %v1249_v0  ;;  %v1035_v3 = vld [vmem:[#allocation6 + $0x28] sm:$0xff]   ;;  %v1036_v4 = vld [vmem:[#allocation6 + $0x20] sm:$0xff]   ;;  %v1037_v5 = vld [vmem:[#allocation6 + $0x18] sm:$0xff]   ;;  %v1251_v11 = vmov 8   ;;  %s784_s4 = sshll.u32 %s1422_s12, 3  ;;  %s796_s9 = sshll.u32 %s1231_s24, 7 }
  0x60   : > { %862 = vmatprep.subr.mxu1 %v1249_v0  ;;  %894 = vmatprep.mubr.msk.f32.mxu1 %vm1250_vm0, %v1249_v0  ;;  %v1038_v6 = vld [vmem:[#allocation6 + $0x10] sm:$0xff]   ;;  %v1039_v7 = vld [vmem:[#allocation6 + $0x8] sm:$0xff]   ;;  %v1040_v8 = vld [vmem:[#allocation6] sm:$0xff]   ;;  %s325_s16 = scalar_lea.vmem [#allocation11], %s784_s4  ;;  %s1498_s10 = scalar_lea.hbm %s1546_s6, %s796_s9 }
  0x61   : > { %843 = vmatpush3.bf16.msra.mxu0 %v1033_v1  ;;  %v354_v9 = vld [vmem:[%s1426_s15] sm:$0x3]  ;;  %1032 = vset.pattern.permute.xlu0 %v1251_v11  ;;  %v472_v13 = vld [vmem:[#allocation8 + $0x70] sm:$0xff]  ;;  %v471_v14 = vld [vmem:[#allocation8 + $0x68] sm:$0xff]  ;;  %s660_s17 = sshll.u32 %s325_s16, 4  ;;  %s647_s19 = scalar_lea.sflag [#allocation5], %s1422_s12  ;;  %s661_s17 = int_to_ptr.vmem [resolvable:$true] %s660_s17 }
  0x62   : > { %844 = vmatprep.subr.bf16.mxu0 %v1249_v0  ;;  %v355_v10 = vunpack.c.l.s8.bf16 %v354_v9  ;;  %v473_v12 = vld [vmem:[#allocation8 + $0x78] sm:$0xff]  ;;  %v470_v15 = vld [vmem:[#allocation8 + $0x60] sm:$0xff]  ;;  %v468_v17 = vld [vmem:[#allocation8 + $0x50] sm:$0xff]  ;;  %s1151_s11 = scalar_lea.vmem %s661_s17, 128  ;;  %s1252_s27 = smov [#allocation11]  }
  0x63   : > { %863 = vmatpush3.msra.mxu1 %v473_v12  ;;  %v469_v16 = vld [vmem:[#allocation8 + $0x58] sm:$0xff]  ;;  %v467_v18 = vld [vmem:[#allocation8 + $0x48] sm:$0xff]  ;;  %v466_v19 = vld [vmem:[#allocation8 + $0x40] sm:$0xff]  ;;  %p1152_p8 = scmp.ne.s32.totalorder %s661_s17, %s1151_s11  ;;  %s1155_s24 = sshll.u32 %s1252_s27, 4  ;;  %s1156_s24 = int_to_ptr.vmem [resolvable:$false] %s1155_s24 }
  0x64   : > { %864 = vmatprep.subr.mxu1 %v1249_v0  ;;  %v465_v20 = vld [vmem:[#allocation8 + $0x38] sm:$0xff]  ;;  %v464_v21 = vld [vmem:[#allocation8 + $0x30] sm:$0xff]  ;;  %v463_v24 = vld [vmem:[#allocation8 + $0x28] sm:$0xff]  ;;  %s1157_s28 = scalar_lea.vmem %s1156_s24, 256  ;;  %p1158_p1 = scmp.lt.s32.totalorder %s661_s17, %s1156_s24 }
  0x65   : > { %845 = vmatpush3.bf16.msra.mxu0 %v1034_v2  ;;  %865 = vmatpush3.msra.mxu1 %v472_v13  ;;  %v462_v26 = vld [vmem:[#allocation8 + $0x20] sm:$0xff]  ;;  %v461_v28 = vld [vmem:[#allocation8 + $0x18] sm:$0xff]  ;;  %v460_v30 = vld [vmem:[#allocation8 + $0x10] sm:$0xff]  ;;  %p1153_p3 = pnand %p1152_p8, %p1394_p6  ;;  %p1159_p4 = scmp.lt.s32.totalorder %s1157_s28, %s1151_s11 }
  0x66   : > { %846 = vmatprep.subr.bf16.mxu0 %v1249_v0  ;;  %866 = vmatprep.subr.mxu1 %v1249_v0  ;;  %v459_v31 = vld [vmem:[#allocation8 + $0x8] sm:$0xff]  ;;  %v458_v32 = vld [vmem:[#allocation8] sm:$0xff]  ;;  %v567_v33 = vld [vmem:[#allocation9 + $0x78] sm:$0xff] }
  0x67   : > { %867 = vmatpush3.msra.mxu1 %v471_v14  ;;  %v566_v34 = vld [vmem:[#allocation9 + $0x70] sm:$0xff]  ;;  %v565_v35 = vld [vmem:[#allocation9 + $0x68] sm:$0xff]  ;;  %v564_v36 = vld [vmem:[#allocation9 + $0x60] sm:$0xff]  ;;  %p1154_p2 = pneg %p1153_p3  ;;  %p1160_p7 = por %p1159_p4, %p1158_p1 }
  0x68   : > { %868 = vmatprep.subr.mxu1 %v1249_v0  ;;  %v563_v37 = vld [vmem:[#allocation9 + $0x58] sm:$0xff]  ;;  %v562_v38 = vld [vmem:[#allocation9 + $0x50] sm:$0xff]  ;;  %v561_v39 = vld [vmem:[#allocation9 + $0x48] sm:$0xff] }
  0x69   : > { %847 = vmatpush3.bf16.msra.mxu0 %v1035_v3  ;;  %869 = vmatpush3.msra.mxu1 %v470_v15  ;;  %v560_v43 = vld [vmem:[#allocation9 + $0x40] sm:$0xff]  ;;  %v559_v44 = vld [vmem:[#allocation9 + $0x38] sm:$0xff]  ;;  %v558_v45 = vld [vmem:[#allocation9 + $0x30] sm:$0xff]  ;;  %p1161_p9 = pnand %p1160_p7, %p1154_p2 }
  0x6a   : > { %848 = vmatprep.subr.bf16.mxu0 %v1249_v0  ;;  %870 = vmatprep.subr.mxu1 %v1249_v0  ;;  %v557_v46 = vld [vmem:[#allocation9 + $0x28] sm:$0xff]  ;;  %v556_v47 = vld [vmem:[#allocation9 + $0x20] sm:$0xff]  ;;  %v555_v48 = vld [vmem:[#allocation9 + $0x18] sm:$0xff] }
  0x6b   : > { %871 = vmatpush3.msra.mxu1 %v469_v16  ;;  %v554_v49 = vld [vmem:[#allocation9 + $0x10] sm:$0xff]  ;;  %v553_v50 = vld [vmem:[#allocation9 + $0x8] sm:$0xff]  ;;  %v552_v51 = vld [vmem:[#allocation9] sm:$0xff] }
  0x6c   : > { %872 = vmatprep.subr.mxu1 %v1249_v0  ;;  %v793_v52 = vld [vmem:[%s1543_s3] ss:$0 sm:$0xff] }
  0x6d   : > { %849 = vmatpush3.bf16.msra.mxu0 %v1036_v4  ;;  %873 = vmatpush3.msra.mxu1 %v468_v17  ;;  %v794_v57 = vld [vmem:[%s1545_s5] ss:$0 sm:$0xff] }
  0x6e   : > { %850 = vmatprep.subr.bf16.mxu0 %v1249_v0  ;;  %874 = vmatprep.subr.mxu1 %v1249_v0 }
  0x6f   : > { %875 = vmatpush3.msra.mxu1 %v467_v18 }
  0x70   : > { %876 = vmatprep.subr.mxu1 %v1249_v0 }
  0x71   : > { %851 = vmatpush3.bf16.msra.mxu0 %v1037_v5  ;;  %877 = vmatpush3.msra.mxu1 %v466_v19 }
  0x72   : > { %852 = vmatprep.subr.bf16.mxu0 %v1249_v0  ;;  %878 = vmatprep.subr.mxu1 %v1249_v0 }
  0x73   : > { %879 = vmatpush3.msra.mxu1 %v465_v20 }
  0x74   : > { %880 = vmatprep.subr.mxu1 %v1249_v0 }
  0x75   : > { %853 = vmatpush3.bf16.msra.mxu0 %v1038_v6  ;;  %881 = vmatpush3.msra.mxu1 %v464_v21 }
  0x76   : > { %854 = vmatprep.subr.bf16.mxu0 %v1249_v0  ;;  %882 = vmatprep.subr.mxu1 %v1249_v0 }
  0x77   : > { %883 = vmatpush3.msra.mxu1 %v463_v24 }
  0x78   : > { %884 = vmatprep.subr.mxu1 %v1249_v0 }
  0x79   : > { %855 = vmatpush3.bf16.msra.mxu0 %v1039_v7  ;;  %885 = vmatpush3.msra.mxu1 %v462_v26 }
  0x7a   : > { %856 = vmatprep.subr.bf16.mxu0 %v1249_v0  ;;  %886 = vmatprep.subr.mxu1 %v1249_v0 }
  0x7b   : > { %887 = vmatpush3.msra.mxu1 %v461_v28 }
  0x7c   : > { %888 = vmatprep.subr.mxu1 %v1249_v0 }
  0x7d   : > { %857 = vmatpush3.bf16.msra.mxu0 %v1040_v8  ;;  %889 = vmatpush3.msra.mxu1 %v460_v30 }
  0x7e   : > { %897 = vmatprep.subr.mxu0 %v1249_v0  ;;  %890 = vmatprep.subr.mxu1 %v1249_v0 }
  0x7f   : > { %891 = vmatpush3.msra.mxu1 %v459_v31 }
  0x80   : > { %859 = vmatmul.mubr.bf16.vlgmr.msra.gmra.mxu0 %v355_v10  ;;  %892 = vmatprep.subr.mxu1 %v1249_v0 }
  0x81   : > { %929 = vmatprep.mubr.msk.f32.mxu0 %vm1250_vm0, %v1249_v0  ;;  %893 = vmatpush3.msra.mxu1 %v458_v32 }
  0x82   : > { %898 = vmatpush3.msra.mxu0 %v567_v33 }
  0x83   : > { %899 = vmatprep.subr.mxu0 %v1249_v0 }
  0x84   : > { %900 = vmatpush3.msra.mxu0 %v566_v34 }
  0x85   : > { %901 = vmatprep.subr.mxu0 %v1249_v0 }
  0x86   : > { %902 = vmatpush3.msra.mxu0 %v565_v35 }
  0x87   : > { %903 = vmatprep.subr.mxu0 %v1249_v0 }
  0x88   : > { %904 = vmatpush3.msra.mxu0 %v564_v36 }
  0x89   : > { %905 = vmatprep.subr.mxu0 %v1249_v0 }
  0x8a   : > { %906 = vmatpush3.msra.mxu0 %v563_v37 }
  0x8b   : > { %907 = vmatprep.subr.mxu0 %v1249_v0 }
  0x8c   : > { %908 = vmatpush3.msra.mxu0 %v562_v38 }
  0x8d   : > { %909 = vmatprep.subr.mxu0 %v1249_v0 }
  0x8e   : > { %910 = vmatpush3.msra.mxu0 %v561_v39 }
  0x8f   : > { %911 = vmatprep.subr.mxu0 %v1249_v0 }
  0x90   : > { %912 = vmatpush3.msra.mxu0 %v560_v43 }
  0x91   : > { %913 = vmatprep.subr.mxu0 %v1249_v0 }
  0x92   : > { %914 = vmatpush3.msra.mxu0 %v559_v44 }
  0x93   : > { %915 = vmatprep.subr.mxu0 %v1249_v0 }
  0x94   : > { %916 = vmatpush3.msra.mxu0 %v558_v45 }
  0x95   : > { %917 = vmatprep.subr.mxu0 %v1249_v0 }
  0x96   : > { %918 = vmatpush3.msra.mxu0 %v557_v46 }
  0x97   : > { %919 = vmatprep.subr.mxu0 %v1249_v0 }
  0x98   : > { %920 = vmatpush3.msra.mxu0 %v556_v47 }
  0x99   : > { %921 = vmatprep.subr.mxu0 %v1249_v0 }
  0x9a   : > { %922 = vmatpush3.msra.mxu0 %v555_v48 }
  0x9b   : > { %923 = vmatprep.subr.mxu0 %v1249_v0 }
  0x9c   : > { %924 = vmatpush3.msra.mxu0 %v554_v49 }
  0x9d   : > { %925 = vmatprep.subr.mxu0 %v1249_v0 }
  0x9e   : > { %926 = vmatpush3.msra.mxu0 %v553_v50 }
  0x9f   : > { %927 = vmatprep.subr.mxu0 %v1249_v0 }
  0xa0   : > { %928 = vmatpush3.msra.mxu0 %v552_v51 }
 0x140   : > { %v438_v22 = vpop.f32.mrf.mxu0 }
 0x141   : > { %v450_v23 = vadd.f32 1e-08, %v438_v22 }
 0x142   : > { %v860_v25 = vpop.f32.mrf.mxu0 }
 0x143   : > { %453 = vperm.xlu0 %1032, %v450_v23  }
 0x144   : > { %v441_v27 = vpop.f32.mrf.mxu0 }
 0x146   : > { %v861_v29 = vpop.f32.mrf.mxu0 }
 0x1be   : > { %v454_v40 = vpop.permute.xlu0 %453 }
 0x1bf   : > { %1041 = vrcp.f32 %v454_v40 }
 0x1cc   : > { %v1042_v41 = vpop.eup %1041 }
 0x1cd   : > { %v457_v42 = vmul.f32 %v1042_v41, %v438_v22 }
 0x1cf   : > { %895 = vmatmul.mubr.f32.vlgmr.msra.gmra.mxu1 %v457_v42 }
 0x28f   : > { %v547_v53 = vpop.f32.mrf.mxu1 }
 0x290   : > { %v548_v54 = vadd.f32 %v793_v52, %v547_v53 }
 0x291   : > { %v896_v55 = vpop.f32.mrf.mxu1 }
 0x292   : > { %1043 = vtanh.f32 %v548_v54 }
 0x29f   : > { %v1044_v56 = vpop.eup %1043 }
 0x2a0   : > { %930 = vmatmul.mubr.f32.vlgmr.msra.gmra.mxu0 %v1044_v56 }
 0x360   : > { %v641_v58 = vpop.f32.mrf.mxu0 }
 0x361   : > { %v642_v59 = vadd.f32 %v794_v57, %v641_v58 }
 0x362   : > { %v931_v60 = vpop.f32.mrf.mxu0 }
 0x363   : > { %645 = vst [vmem:[%s325_s16] sm:$0xff] %v642_v59 }
 0x364   : > { %1164 = shalt.err (!%p1161_p9)
}
 0x365   : > { %s1165_s15 = scalar_lea.hbm %s1498_s10, 128  ;;  %s1169_s2 = scalar_lea.hbm %s1546_s6, 256 }
 0x366   : > { %p1166_p13 = scmp.ne.s32.totalorder %s1498_s10, %s1165_s15  ;;  %p1170_p5 = scmp.lt.s32.totalorder %s1498_s10, %s1546_s6 }
 0x367   : > { %p1171_p10 = scmp.lt.s32.totalorder %s1169_s2, %s1165_s15 }
 0x368   : > { %p1167_p12 = pnand %p1166_p13, %p1394_p6 }
 0x369   : > { %p1172_p11 = por %p1171_p10, %p1170_p5 }
 0x36a   : > { %p1168_p0 = pneg %p1167_p12 }
 0x36c   : > { %p1173_p8 = pnand %p1172_p11, %p1168_p0 }
 0x36e   : > { %1176 = shalt.err (!%p1173_p8)
}
 0x36f   : > { %946 = dma.vmem_to_hbm [thread:$0]  (%p1394_p6), %s661_s17, 128, %s1498_s10, %s647_s19  }
 0x370 PF: > { %s672_s7 = sand.u32 1, %s1219_s21   ;;  %p1567_p3 = scmp.ne.s32.totalorder %s1556_s8, 0 }
 0x371   : > { %p1568_p2 = scmp.ge.s32.totalorder %s1239_s26, 2  ;;  %s673_s9 = scalar_lea.sflag [#allocation5], %s672_s7 }
 0x373   : > { %p963_p1 = pnand %p1568_p2, %p1567_p3 }
 0x375   : > { %p964_p4 = pneg %p963_p1 }
 0x377   : > { %1214 = dma.done.wait (%p964_p4), %s673_s9, 128  }
 0x378   : > { %1216 = vsyncadd (%p964_p4), %s673_s9, 4294967168  ;;  %s24_s26 = sadd.s32 1, %s1239_s26   ;;  %s1569_s21 = smov %s1223_s22 }
 0x379   : > { %p21_p7 = scmp.ge.s32.totalorder %s24_s26, 4   ;;  %s1570_s22 = smov %s1227_s23 }
 0x37a   : > { %s1571_s23 = smov %s1403_s13  ;;  %s1572_s24 = smov %s1235_s25 }
 0x37b   : > { %s1573_s25 = smov %s1575_s14  ;;  %23 = sbr.rel (!%p21_p7) target bundleno = 12 (0xc), region = 110 }
 0x380   :  { %678 = vsyncpa [#allocation4], 1 }
 0x381   :  { %680 = vsyncpa [#allocation4 + $0x1], 1 }
 0x382   :  { %681 = vsyncpa [#allocation7], 1 }
 0x383   :  { %682 = vsyncpa [#allocation10], 1 }
 0x384   :  { %683 = vsyncpa [#allocation5], 1 }
 0x385   :  { %685 = vsyncpa [#allocation5 + $0x1], 1 }

</bundles_post_ra>
